<compile_context>
chip_gen: v7x
topology: tpu7x:2x2x1
jax: 0.10.0
libtpu: 0.0.40
codegen_flags: <defaults>
</compile_context>

<pallas_src>
import numpy as np

import jax
import jax.numpy as jnp
from jax.experimental import pallas as pl
from jax.experimental.pallas import tpu as pltpu


_BN_EPS = 0.8       # nn.BatchNorm2d(out_filters, 0.8) -> eps = 0.8
_PAD_ROWS = 8       # zero halo rows prepended to every stored feature map (tile aligned)


# ----------------------------------------------------------------------------
# Fused kernel: 4 conv blocks + linear head, one branch / batch-tile per step.
# ----------------------------------------------------------------------------
def _conv_block(in_ref, wb_ref, sh_ref, mask_ref):
    """Conv2d(3,2,1) [+folded BN] + LeakyReLU(0.2) as one banded matmul.

    in_ref  : (_PAD_ROWS + N*H, W*C) f32.  Row _PAD_ROWS + b*H + i holds
              input[b, :, i, :] with lane index j*C + c; rows [0, _PAD_ROWS) are 0.
    wb_ref  : (3*W*C, (W//2)*C_out) bf16 banded weight (3 vertical taps stacked on K,
              horizontal taps folded into the band structure, BN scale folded in).
    sh_ref  : (1, (W//2)*C_out) f32 folded conv-bias + BN shift.
    mask_ref: (N*H//2, 1) f32, zero on rows whose ky=0 tap crosses an image top edge.
    """
    m_out = (in_ref.shape[0] - _PAD_ROWS) // 2
    # Vertical 3x3/stride-2 taps via sublane-strided reads (rows 2*i2-1, 2*i2, 2*i2+1).
    up = in_ref[pl.ds(_PAD_ROWS - 1, m_out, 2), :] * mask_ref[...]
    mid = in_ref[pl.ds(_PAD_ROWS, m_out, 2), :]
    down = in_ref[pl.ds(_PAD_ROWS + 1, m_out, 2), :]
    # Single contraction per layer: K = 3 * W * C_in, N = (W/2) * C_out.
    patches = jnp.concatenate([up, mid, down], axis=1).astype(jnp.bfloat16)
    acc = jnp.dot(patches, wb_ref[...], preferred_element_type=jnp.float32)
    acc = acc + sh_ref[...]
    return jnp.maximum(acc, 0.2 * acc)          # LeakyReLU(0.2)


def _store_with_halo(dst_ref, a):
    dst_ref[pl.ds(0, _PAD_ROWS), :] = jnp.zeros((_PAD_ROWS, a.shape[1]), dst_ref.dtype)
    dst_ref[pl.ds(_PAD_ROWS, a.shape[0]), :] = a


def _coupled_disc_kernel(img_ref,
                         wb1_ref, wb2_ref, wb3_ref, wb4_ref,
                         sh1_ref, sh2_ref, sh3_ref, sh4_ref,
                         m1_ref, m2_ref, m3_ref, m4_ref,
                         wh_ref, gs_ref, bh_ref,
                         out_ref,
                         r2_ref, r3_ref, r4_ref):
    a = _conv_block(img_ref, wb1_ref, sh1_ref, m1_ref)      # block 1 (no BN)
    _store_with_halo(r2_ref, a)
    a = _conv_block(r2_ref, wb2_ref, sh2_ref, m2_ref)       # block 2
    _store_with_halo(r3_ref, a)
    a = _conv_block(r3_ref, wb3_ref, sh3_ref, m3_ref)       # block 3
    _store_with_halo(r4_ref, a)
    a = _conv_block(r4_ref, wb4_ref, sh4_ref, m4_ref)       # block 4 -> (bt*ds, ds*128)
    # Dropout2d(0.25): identity in eval mode.

    # Fused Linear head: validity[b] = sum_{c,h,w} feat[b,c,h,w] * W[c,h,w] + bias.
    rs = jnp.sum(a * wh_ref[...], axis=-1, keepdims=True)   # (bt*ds, 1)
    if wh_ref.shape[0] == out_ref.shape[0]:                  # ds == 1: one row per sample
        out_ref[...] = rs + bh_ref[...]
    else:                                                    # general ds: per-sample row sum
        out_ref[...] = (jnp.dot(gs_ref[...], rs, preferred_element_type=jnp.float32)
                        + bh_ref[...])


# ----------------------------------------------------------------------------
# pallas_call wrapper
# ----------------------------------------------------------------------------
def _fused_forward(prepped, imgs, n, bt):
    n_tiles = n // bt
    rows_per_tile = imgs.shape[1] // n_tiles
    masks = prepped["masks"]

    def branch_spec(arr):
        nrest = arr.ndim - 1
        return pl.BlockSpec((None,) + arr.shape[1:],
                            lambda br, t, _n=nrest: (br,) + (0,) * _n)

    def shared_spec(arr):
        nd = arr.ndim
        return pl.BlockSpec(arr.shape, lambda br, t, _n=nd: (0,) * _n)

    in_specs = ([pl.BlockSpec((None, rows_per_tile, imgs.shape[-1]),
                              lambda br, t: (br, t, 0))]
                + [branch_spec(x) for x in prepped["wb"]]
                + [branch_spec(x) for x in prepped["sh"]]
                + [shared_spec(x) for x in masks]
                + [branch_spec(prepped["w_head"]),
                   shared_spec(prepped["g_sum"]),
                   branch_spec(prepped["b_head"])])

    # Per-layer activation buffers (with zero halo) for the strided tap gathers.
    scratch = [pltpu.VMEM((_PAD_ROWS + masks[k].shape[0],
                           prepped["sh"][k].shape[-1]), jnp.float32)
               for k in range(3)]

    return pl.pallas_call(
        _coupled_disc_kernel,
        out_shape=jax.ShapeDtypeStruct((2, n, 1), jnp.float32),
        grid=(2, n_tiles),                             # (branch, batch tile)
        in_specs=in_specs,
        out_specs=pl.BlockSpec((None, bt, 1), lambda br, t: (br, t, 0)),
        scratch_shapes=scratch,
        compiler_params=pltpu.CompilerParams(
            dimension_semantics=("parallel", "arbitrary"),   # branch axis megacore on v7x
            vmem_limit_bytes=48 * 1024 * 1024),
    )(imgs, *prepped["wb"], *prepped["sh"], *masks,
      prepped["w_head"], prepped["g_sum"], prepped["b_head"])


# ----------------------------------------------------------------------------
# Forward (mirrors CoupledDiscriminators.forward, eval mode)
# ----------------------------------------------------------------------------
def coupled_discriminators(prepped, img1, img2):
    n, c, h, w = img1.shape
    c_pad = prepped["wb"][0].shape[1] // (3 * w)
    bt = (2 * prepped["masks"][0].shape[0]) // h             # batch-tile size
    imgs = jnp.stack([img1, img2], axis=0)                   # (2, N, C, H, W)
    imgs = jnp.transpose(imgs, (0, 1, 3, 4, 2))              # (2, N, H, W, C)
    imgs = jnp.pad(imgs, ((0, 0), (0, 0), (0, 0), (0, 0), (0, c_pad - c)))
    imgs = imgs.reshape(2, n // bt, bt * h, w * c_pad)
    imgs = jnp.pad(imgs, ((0, 0), (0, 0), (_PAD_ROWS, 0), (0, 0)))   # per-tile zero halo
    imgs = imgs.reshape(2, (n // bt) * (_PAD_ROWS + bt * h), w * c_pad)
    out = _fused_forward(prepped, imgs, n, bt)                # (2, N, 1)
    return out[0], out[1]


# ----------------------------------------------------------------------------
# Host-side parameter preparation (done once, outside the hot path)
# ----------------------------------------------------------------------------
def _banded_conv_weight(w, scale, c_in, c_in_pad, w_in):
    """(C_out, C_in, 3, 3) conv weight (+BN scale) -> (3*W*C_in_pad, (W/2)*C_out)."""
    c_out = w.shape[0]
    w_out = w_in // 2
    wf = np.asarray(w, np.float32) * np.asarray(scale, np.float32)[:, None, None, None]
    wb = np.zeros((3, w_in * c_in_pad, w_out * c_out), np.float32)
    for j_out in range(w_out):
        for kx in range(3):
            j_in = 2 * j_out - 1 + kx
            if 0 <= j_in < w_in:
                for ky in range(3):
                    wb[ky,
                       j_in * c_in_pad: j_in * c_in_pad + c_in,
                       j_out * c_out: (j_out + 1) * c_out] = wf[:, :, ky, kx].T
    return wb.reshape(3 * w_in * c_in_pad, w_out * c_out)


def prepare_params(raw1, raw2, *, img_size, channels, batch, batch_tile=None):
    """Fold bias/BN, build banded conv weights, shift vectors, masks and head weights."""
    assert img_size % 16 == 0, "img_size must be a multiple of 16"
    n = batch
    bt = n if batch_tile is None else batch_tile
    assert n % bt == 0 and (bt == n or bt % 8 == 0)
    c_pad = 8
    assert channels <= c_pad
    ds = img_size // 16

    cins = [channels, 16, 32, 64]
    cpads = [c_pad, 16, 32, 64]
    wins = [img_size // (2 ** l) for l in range(4)]
    houts = [img_size // (2 ** (l + 1)) for l in range(4)]

    # Shared structural operands (identical for both branches / all batch tiles).
    masks = []
    for hl in houts:
        m = np.ones((bt * hl, 1), np.float32)
        m[::hl] = 0.0                           # i2 == 0 rows: ky=0 tap is image padding
        masks.append(jnp.asarray(m))
    g_sum = jnp.asarray(np.kron(np.eye(bt, dtype=np.float32),
                                np.ones((1, ds), np.float32)))        # (bt, bt*ds)

    def prep_branch(raw):
        wbs, shs = [], []
        for l, (w, b, scale, shift) in enumerate(raw["conv"]):
            wbs.append(jnp.asarray(
                _banded_conv_weight(np.asarray(w), np.asarray(scale),
                                    cins[l], cpads[l], wins[l]),
                dtype=jnp.bfloat16))
            sh = np.tile(np.asarray(b, np.float32) * np.asarray(scale, np.float32)
                         + np.asarray(shift, np.float32), wins[l] // 2)
            shs.append(jnp.asarray(sh.reshape(1, -1)))
        # Linear head weight in (row=(b,i), lane=(j,c)) layout, tiled to the batch
        # tile only (not the full batch).
        lw = np.asarray(raw["lin_w"], np.float32).reshape(128, ds, ds)   # (c, i, j)
        wr = lw.transpose(1, 2, 0).reshape(ds, ds * 128)                 # [i, j*128 + c]
        w_head = jnp.asarray(np.tile(wr, (bt, 1)))                       # (bt*ds, ds*128)
        b_head = jnp.asarray(np.asarray(raw["lin_b"], np.float32).reshape(1, 1))
        return wbs, shs, w_head, b_head

    wa, sha, wha, bha = prep_branch(raw1)
    wb_, shb, whb, bhb = prep_branch(raw2)
    stk = lambda x, y: jnp.stack([x, y], axis=0)
    return {
        "wb": [stk(a, b) for a, b in zip(wa, wb_)],   # 4 x (2, 3*W*Cin_pad, (W/2)*Cout) bf16
        "sh": [stk(a, b) for a, b in zip(sha, shb)],  # 4 x (2, 1, (W/2)*Cout) f32
        "masks": masks,                               # 4 x (bt*H_out, 1) f32, shared
        "w_head": stk(wha, whb),                      # (2, bt*ds, ds*128) f32
        "g_sum": g_sum,                               # (bt, bt*ds) f32, shared
        "b_head": stk(bha, bhb),                      # (2, 1, 1) f32
    }


# ----------------------------------------------------------------------------
# Synthetic parameters (deterministic) + pure-JAX f32 reference
# ----------------------------------------------------------------------------
def _init_branch(key, channels, img_size):
    filt = [(channels, 16, False), (16, 32, True), (32, 64, True), (64, 128, True)]
    layers = []
    for cin, cout, bn in filt:
        key, kw, kb, kg, kbe, km = jax.random.split(key, 6)
        w = jax.random.normal(kw, (cout, cin, 3, 3), jnp.float32) * 0.1
        b = jax.random.normal(kb, (cout,), jnp.float32) * 0.1
        if bn:
            gamma = 1.0 + 0.1 * jax.random.normal(kg, (cout,), jnp.float32)
            beta = 0.1 * jax.random.normal(kbe, (cout,), jnp.float32)
            run_mean = 0.1 * jax.random.normal(km, (cout,), jnp.float32)
            run_var = jnp.ones((cout,), jnp.float32)
            scale = gamma / jnp.sqrt(run_var + _BN_EPS)
            shift = beta - run_mean * scale
        else:
            scale = jnp.ones((cout,), jnp.float32)
            shift = jnp.zeros((cout,), jnp.float32)
        layers.append((w, b, scale, shift))
    ds = img_size // 2 ** 4
    feat = 128 * ds * ds
    key, kw, kb = jax.random.split(key, 3)
    lin_w = jax.random.normal(kw, (1, feat), jnp.float32) * 0.1
    lin_b = jax.random.normal(kb, (1,), jnp.float32) * 0.1
    return {"conv": layers, "lin_w": lin_w, "lin_b": lin_b}


def _reference_forward(raw, img_nchw):
    """Pure-JAX f32 reference (eval mode): Conv -> BN -> LeakyReLU, then Linear."""
    x = img_nchw
    for (w, b, scale, shift) in raw["conv"]:
        x = jax.lax.conv_general_dilated(
            x, w, window_strides=(2, 2), padding=((1, 1), (1, 1)),
            dimension_numbers=("NCHW", "OIHW", "NCHW"),
            precision=jax.lax.Precision.HIGHEST)
        x = x + b[None, :, None, None]
        x = x * scale[None, :, None, None] + shift[None, :, None, None]
        x = jnp.where(x > 0.0, x, 0.2 * x)
    x = x.reshape(x.shape[0], -1)
    return x @ raw["lin_w"].T + raw["lin_b"][None, :]


# ----------------------------------------------------------------------------
# Main
# ----------------------------------------------------------------------------
if __name__ == "__main__":
    IMG_SIZE, CHANNELS, BATCH = 16, 3, 2

    key = jax.random.PRNGKey(0)
    k_p1, k_p2, k_i1, k_i2 = jax.random.split(key, 4)
    raw1 = _init_branch(k_p1, CHANNELS, IMG_SIZE)
    raw2 = _init_branch(k_p2, CHANNELS, IMG_SIZE)
    img1 = jax.random.normal(k_i1, (BATCH, CHANNELS, IMG_SIZE, IMG_SIZE), jnp.float32)
    img2 = jax.random.normal(k_i2, (BATCH, CHANNELS, IMG_SIZE, IMG_SIZE), jnp.float32)

    prepped = prepare_params(raw1, raw2, img_size=IMG_SIZE, channels=CHANNELS,
                             batch=BATCH)
    fwd = jax.jit(coupled_discriminators)
    validity1, validity2 = fwd(prepped, img1, img2)
    jax.block_until_ready((validity1, validity2))

    assert validity1.shape == (BATCH, 1) and validity2.shape == (BATCH, 1)

    # Correctness check vs a pure-JAX f32 reference (loose tolerance: bf16 MXU
    # operands with f32 accumulation).
    ref1 = _reference_forward(raw1, img1)
    ref2 = _reference_forward(raw2, img2)
    assert jnp.allclose(validity1, ref1, rtol=5e-2, atol=5e-2)
    assert jnp.allclose(validity2, ref2, rtol=5e-2, atol=5e-2)

    print("KERNEL_OK")
</pallas_src>

<mosaic_0001>
module attributes {stable_mosaic.version = 11 : i64} {
  func.func @_coupled_disc_kernel(%arg0: i32, %arg1: i32, %arg2: memref<1x40x128xf32, #tpu.memory_space<vmem>>, %arg3: memref<1x384x128xbf16, #tpu.memory_space<vmem>>, %arg4: memref<1x384x128xbf16, #tpu.memory_space<vmem>>, %arg5: memref<1x384x128xbf16, #tpu.memory_space<vmem>>, %arg6: memref<1x384x128xbf16, #tpu.memory_space<vmem>>, %arg7: memref<1x1x128xf32, #tpu.memory_space<vmem>>, %arg8: memref<1x1x128xf32, #tpu.memory_space<vmem>>, %arg9: memref<1x1x128xf32, #tpu.memory_space<vmem>>, %arg10: memref<1x1x128xf32, #tpu.memory_space<vmem>>, %arg11: memref<16x1xf32, #tpu.memory_space<vmem>>, %arg12: memref<8x1xf32, #tpu.memory_space<vmem>>, %arg13: memref<4x1xf32, #tpu.memory_space<vmem>>, %arg14: memref<2x1xf32, #tpu.memory_space<vmem>>, %arg15: memref<1x2x128xf32, #tpu.memory_space<vmem>>, %arg16: memref<2x2xf32, #tpu.memory_space<vmem>>, %arg17: memref<1x1x1xf32, #tpu.memory_space<vmem>>, %arg18: memref<1x2x1xf32, #tpu.memory_space<vmem>>, %arg19: memref<24x128xf32, #tpu.memory_space<vmem>>, %arg20: memref<16x128xf32, #tpu.memory_space<vmem>>, %arg21: memref<12x128xf32, #tpu.memory_space<vmem>>) attributes {dimension_semantics = [#tpu.dimension_semantics<parallel>, #tpu.dimension_semantics<arbitrary>], iteration_bounds = array<i64: 2, 1>, scalar_prefetch = 0 : i64, scratch_operands = 3 : i64, tpu.core_type = #tpu.core_type<tc>, window_params = [{transform_indices = @transform_0, window_bounds = array<i64: 1, 40, 128>}, {transform_indices = @transform_1, window_bounds = array<i64: 1, 384, 128>}, {transform_indices = @transform_2, window_bounds = array<i64: 1, 384, 128>}, {transform_indices = @transform_3, window_bounds = array<i64: 1, 384, 128>}, {transform_indices = @transform_4, window_bounds = array<i64: 1, 384, 128>}, {transform_indices = @transform_5, window_bounds = array<i64: 1, 1, 128>}, {transform_indices = @transform_6, window_bounds = array<i64: 1, 1, 128>}, {transform_indices = @transform_7, window_bounds = array<i64: 1, 1, 128>}, {transform_indices = @transform_8, window_bounds = array<i64: 1, 1, 128>}, {pipeline_mode = #tpu.pipeline_mode<synchronous>, transform_indices = @transform_9, window_bounds = array<i64: 16, 1>}, {pipeline_mode = #tpu.pipeline_mode<synchronous>, transform_indices = @transform_10, window_bounds = array<i64: 8, 1>}, {pipeline_mode = #tpu.pipeline_mode<synchronous>, transform_indices = @transform_11, window_bounds = array<i64: 4, 1>}, {pipeline_mode = #tpu.pipeline_mode<synchronous>, transform_indices = @transform_12, window_bounds = array<i64: 2, 1>}, {transform_indices = @transform_13, window_bounds = array<i64: 1, 2, 128>}, {pipeline_mode = #tpu.pipeline_mode<synchronous>, transform_indices = @transform_14, window_bounds = array<i64: 2, 2>}, {transform_indices = @transform_15, window_bounds = array<i64: 1, 1, 1>}, {transform_indices = @transform_16, window_bounds = array<i64: 1, 2, 1>}]} {
    %c0 = arith.constant 0 : index
    %c7 = arith.constant 7 : index
    %c0_0 = arith.constant 0 : index
    %0 = tpu.strided_load %arg2[%c0, %c7, %c0_0] {strides = array<i32: 1, 2, 1>} : memref<1x40x128xf32, #tpu.memory_space<vmem>>, vector<1x16x128xf32>
    %1 = vector.shape_cast %0 : vector<1x16x128xf32> to vector<16x128xf32>
    %c0_1 = arith.constant 0 : index
    %c0_2 = arith.constant 0 : index
    %2 = vector.load %arg11[%c0_1, %c0_2] : memref<16x1xf32, #tpu.memory_space<vmem>>, vector<16x1xf32>
    %3 = vector.broadcast %2 : vector<16x1xf32> to vector<16x128xf32>
    %4 = arith.mulf %1, %3 : vector<16x128xf32>
    %c0_3 = arith.constant 0 : index
    %c8 = arith.constant 8 : index
    %c0_4 = arith.constant 0 : index
    %5 = tpu.strided_load %arg2[%c0_3, %c8, %c0_4] {strides = array<i32: 1, 2, 1>} : memref<1x40x128xf32, #tpu.memory_space<vmem>>, vector<1x16x128xf32>
    %6 = vector.shape_cast %5 : vector<1x16x128xf32> to vector<16x128xf32>
    %c0_5 = arith.constant 0 : index
    %c9 = arith.constant 9 : index
    %c0_6 = arith.constant 0 : index
    %7 = tpu.strided_load %arg2[%c0_5, %c9, %c0_6] {strides = array<i32: 1, 2, 1>} : memref<1x40x128xf32, #tpu.memory_space<vmem>>, vector<1x16x128xf32>
    %8 = vector.shape_cast %7 : vector<1x16x128xf32> to vector<16x128xf32>
    %9 = tpu.concatenate %4, %6, %8 in 1 : vector<16x128xf32>, vector<16x128xf32>, vector<16x128xf32> -> vector<16x384xf32>
    %10 = arith.truncf %9 : vector<16x384xf32> to vector<16x384xbf16>
    %c0_7 = arith.constant 0 : index
    %c0_8 = arith.constant 0 : index
    %c0_9 = arith.constant 0 : index
    %11 = vector.load %arg3[%c0_7, %c0_8, %c0_9] : memref<1x384x128xbf16, #tpu.memory_space<vmem>>, vector<1x384x128xbf16>
    %12 = vector.shape_cast %11 : vector<1x384x128xbf16> to vector<384x128xbf16>
    %cst = arith.constant dense<0.000000e+00> : vector<16x128xf32>
    %13 = tpu.matmul %10, %12, %cst {dimension_numbers = #tpu.dot_dimension_numbers<[1], [0], [0], [1], [0, 0, 1, 1], [], []>} : vector<16x384xbf16>, vector<384x128xbf16>, vector<16x128xf32> -> vector<16x128xf32>
    %c0_10 = arith.constant 0 : index
    %c0_11 = arith.constant 0 : index
    %c0_12 = arith.constant 0 : index
    %14 = vector.load %arg7[%c0_10, %c0_11, %c0_12] : memref<1x1x128xf32, #tpu.memory_space<vmem>>, vector<1x1x128xf32>
    %15 = vector.shape_cast %14 : vector<1x1x128xf32> to vector<1x128xf32>
    %16 = vector.broadcast %15 : vector<1x128xf32> to vector<16x128xf32>
    %17 = arith.addf %13, %16 : vector<16x128xf32>
    %cst_13 = arith.constant 2.000000e-01 : f32
    %18 = vector.broadcast %cst_13 : f32 to vector<16x128xf32>
    %19 = arith.mulf %18, %17 : vector<16x128xf32>
    %20 = arith.maximumf %17, %19 : vector<16x128xf32>
    %cst_14 = arith.constant 0.000000e+00 : f32
    %21 = vector.broadcast %cst_14 : f32 to vector<8x128xf32>
    %c0_15 = arith.constant 0 : index
    %c0_16 = arith.constant 0 : index
    %22 = vector.load %arg19[%c0_15, %c0_16] : memref<24x128xf32, #tpu.memory_space<vmem>>, vector<8x128xf32>
    tpu.vector_store %arg19[%c0_15, %c0_16], %21 {strides = array<i32>} : memref<24x128xf32, #tpu.memory_space<vmem>>, vector<8x128xf32>,
    %c8_17 = arith.constant 8 : index
    %c0_18 = arith.constant 0 : index
    %23 = vector.load %arg19[%c8_17, %c0_18] : memref<24x128xf32, #tpu.memory_space<vmem>>, vector<16x128xf32>
    tpu.vector_store %arg19[%c8_17, %c0_18], %20 {strides = array<i32>} : memref<24x128xf32, #tpu.memory_space<vmem>>, vector<16x128xf32>,
    %c7_19 = arith.constant 7 : index
    %c0_20 = arith.constant 0 : index
    %24 = tpu.strided_load %arg19[%c7_19, %c0_20] {strides = array<i32: 2, 1>} : memref<24x128xf32, #tpu.memory_space<vmem>>, vector<8x128xf32>
    %c0_21 = arith.constant 0 : index
    %c0_22 = arith.constant 0 : index
    %25 = vector.load %arg12[%c0_21, %c0_22] : memref<8x1xf32, #tpu.memory_space<vmem>>, vector<8x1xf32>
    %26 = vector.broadcast %25 : vector<8x1xf32> to vector<8x128xf32>
    %27 = arith.mulf %24, %26 : vector<8x128xf32>
    %c8_23 = arith.constant 8 : index
    %c0_24 = arith.constant 0 : index
    %28 = tpu.strided_load %arg19[%c8_23, %c0_24] {strides = array<i32: 2, 1>} : memref<24x128xf32, #tpu.memory_space<vmem>>, vector<8x128xf32>
    %c9_25 = arith.constant 9 : index
    %c0_26 = arith.constant 0 : index
    %29 = tpu.strided_load %arg19[%c9_25, %c0_26] {strides = array<i32: 2, 1>} : memref<24x128xf32, #tpu.memory_space<vmem>>, vector<8x128xf32>
    %30 = tpu.concatenate %27, %28, %29 in 1 : vector<8x128xf32>, vector<8x128xf32>, vector<8x128xf32> -> vector<8x384xf32>
    %31 = arith.truncf %30 : vector<8x384xf32> to vector<8x384xbf16>
    %c0_27 = arith.constant 0 : index
    %c0_28 = arith.constant 0 : index
    %c0_29 = arith.constant 0 : index
    %32 = vector.load %arg4[%c0_27, %c0_28, %c0_29] : memref<1x384x128xbf16, #tpu.memory_space<vmem>>, vector<1x384x128xbf16>
    %33 = vector.shape_cast %32 : vector<1x384x128xbf16> to vector<384x128xbf16>
    %cst_30 = arith.constant dense<0.000000e+00> : vector<8x128xf32>
    %34 = tpu.matmul %31, %33, %cst_30 {dimension_numbers = #tpu.dot_dimension_numbers<[1], [0], [0], [1], [0, 0, 1, 1], [], []>} : vector<8x384xbf16>, vector<384x128xbf16>, vector<8x128xf32> -> vector<8x128xf32>
    %c0_31 = arith.constant 0 : index
    %c0_32 = arith.constant 0 : index
    %c0_33 = arith.constant 0 : index
    %35 = vector.load %arg8[%c0_31, %c0_32, %c0_33] : memref<1x1x128xf32, #tpu.memory_space<vmem>>, vector<1x1x128xf32>
    %36 = vector.shape_cast %35 : vector<1x1x128xf32> to vector<1x128xf32>
    %37 = vector.broadcast %36 : vector<1x128xf32> to vector<8x128xf32>
    %38 = arith.addf %34, %37 : vector<8x128xf32>
    %cst_34 = arith.constant 2.000000e-01 : f32
    %39 = vector.broadcast %cst_34 : f32 to vector<8x128xf32>
    %40 = arith.mulf %39, %38 : vector<8x128xf32>
    %41 = arith.maximumf %38, %40 : vector<8x128xf32>
    %cst_35 = arith.constant 0.000000e+00 : f32
    %42 = vector.broadcast %cst_35 : f32 to vector<8x128xf32>
    %c0_36 = arith.constant 0 : index
    %c0_37 = arith.constant 0 : index
    %43 = vector.load %arg20[%c0_36, %c0_37] : memref<16x128xf32, #tpu.memory_space<vmem>>, vector<8x128xf32>
    tpu.vector_store %arg20[%c0_36, %c0_37], %42 {strides = array<i32>} : memref<16x128xf32, #tpu.memory_space<vmem>>, vector<8x128xf32>,
    %c8_38 = arith.constant 8 : index
    %c0_39 = arith.constant 0 : index
    %44 = vector.load %arg20[%c8_38, %c0_39] : memref<16x128xf32, #tpu.memory_space<vmem>>, vector<8x128xf32>
    tpu.vector_store %arg20[%c8_38, %c0_39], %41 {strides = array<i32>} : memref<16x128xf32, #tpu.memory_space<vmem>>, vector<8x128xf32>,
    %c7_40 = arith.constant 7 : index
    %c0_41 = arith.constant 0 : index
    %45 = tpu.strided_load %arg20[%c7_40, %c0_41] {strides = array<i32: 2, 1>} : memref<16x128xf32, #tpu.memory_space<vmem>>, vector<4x128xf32>
    %c0_42 = arith.constant 0 : index
    %c0_43 = arith.constant 0 : index
    %46 = vector.load %arg13[%c0_42, %c0_43] : memref<4x1xf32, #tpu.memory_space<vmem>>, vector<4x1xf32>
    %47 = vector.broadcast %46 : vector<4x1xf32> to vector<4x128xf32>
    %48 = arith.mulf %45, %47 : vector<4x128xf32>
    %c8_44 = arith.constant 8 : index
    %c0_45 = arith.constant 0 : index
    %49 = tpu.strided_load %arg20[%c8_44, %c0_45] {strides = array<i32: 2, 1>} : memref<16x128xf32, #tpu.memory_space<vmem>>, vector<4x128xf32>
    %c9_46 = arith.constant 9 : index
    %c0_47 = arith.constant 0 : index
    %50 = tpu.strided_load %arg20[%c9_46, %c0_47] {strides = array<i32: 2, 1>} : memref<16x128xf32, #tpu.memory_space<vmem>>, vector<4x128xf32>
    %51 = tpu.concatenate %48, %49, %50 in 1 : vector<4x128xf32>, vector<4x128xf32>, vector<4x128xf32> -> vector<4x384xf32>
    %52 = arith.truncf %51 : vector<4x384xf32> to vector<4x384xbf16>
    %c0_48 = arith.constant 0 : index
    %c0_49 = arith.constant 0 : index
    %c0_50 = arith.constant 0 : index
    %53 = vector.load %arg5[%c0_48, %c0_49, %c0_50] : memref<1x384x128xbf16, #tpu.memory_space<vmem>>, vector<1x384x128xbf16>
    %54 = vector.shape_cast %53 : vector<1x384x128xbf16> to vector<384x128xbf16>
    %cst_51 = arith.constant dense<0.000000e+00> : vector<4x128xf32>
    %55 = tpu.matmul %52, %54, %cst_51 {dimension_numbers = #tpu.dot_dimension_numbers<[1], [0], [0], [1], [0, 0, 1, 1], [], []>} : vector<4x384xbf16>, vector<384x128xbf16>, vector<4x128xf32> -> vector<4x128xf32>
    %c0_52 = arith.constant 0 : index
    %c0_53 = arith.constant 0 : index
    %c0_54 = arith.constant 0 : index
    %56 = vector.load %arg9[%c0_52, %c0_53, %c0_54] : memref<1x1x128xf32, #tpu.memory_space<vmem>>, vector<1x1x128xf32>
    %57 = vector.shape_cast %56 : vector<1x1x128xf32> to vector<1x128xf32>
    %58 = vector.broadcast %57 : vector<1x128xf32> to vector<4x128xf32>
    %59 = arith.addf %55, %58 : vector<4x128xf32>
    %cst_55 = arith.constant 2.000000e-01 : f32
    %60 = vector.broadcast %cst_55 : f32 to vector<4x128xf32>
    %61 = arith.mulf %60, %59 : vector<4x128xf32>
    %62 = arith.maximumf %59, %61 : vector<4x128xf32>
    %cst_56 = arith.constant 0.000000e+00 : f32
    %63 = vector.broadcast %cst_56 : f32 to vector<8x128xf32>
    %c0_57 = arith.constant 0 : index
    %c0_58 = arith.constant 0 : index
    %64 = vector.load %arg21[%c0_57, %c0_58] : memref<12x128xf32, #tpu.memory_space<vmem>>, vector<8x128xf32>
    tpu.vector_store %arg21[%c0_57, %c0_58], %63 {strides = array<i32>} : memref<12x128xf32, #tpu.memory_space<vmem>>, vector<8x128xf32>,
    %c8_59 = arith.constant 8 : index
    %c0_60 = arith.constant 0 : index
    %65 = vector.load %arg21[%c8_59, %c0_60] : memref<12x128xf32, #tpu.memory_space<vmem>>, vector<4x128xf32>
    tpu.vector_store %arg21[%c8_59, %c0_60], %62 {strides = array<i32>} : memref<12x128xf32, #tpu.memory_space<vmem>>, vector<4x128xf32>,
    %c7_61 = arith.constant 7 : index
    %c0_62 = arith.constant 0 : index
    %66 = tpu.strided_load %arg21[%c7_61, %c0_62] {strides = array<i32: 2, 1>} : memref<12x128xf32, #tpu.memory_space<vmem>>, vector<2x128xf32>
    %c0_63 = arith.constant 0 : index
    %c0_64 = arith.constant 0 : index
    %67 = vector.load %arg14[%c0_63, %c0_64] : memref<2x1xf32, #tpu.memory_space<vmem>>, vector<2x1xf32>
    %68 = vector.broadcast %67 : vector<2x1xf32> to vector<2x128xf32>
    %69 = arith.mulf %66, %68 : vector<2x128xf32>
    %c8_65 = arith.constant 8 : index
    %c0_66 = arith.constant 0 : index
    %70 = tpu.strided_load %arg21[%c8_65, %c0_66] {strides = array<i32: 2, 1>} : memref<12x128xf32, #tpu.memory_space<vmem>>, vector<2x128xf32>
    %c9_67 = arith.constant 9 : index
    %c0_68 = arith.constant 0 : index
    %71 = tpu.strided_load %arg21[%c9_67, %c0_68] {strides = array<i32: 2, 1>} : memref<12x128xf32, #tpu.memory_space<vmem>>, vector<2x128xf32>
    %72 = tpu.concatenate %69, %70, %71 in 1 : vector<2x128xf32>, vector<2x128xf32>, vector<2x128xf32> -> vector<2x384xf32>
    %73 = arith.truncf %72 : vector<2x384xf32> to vector<2x384xbf16>
    %c0_69 = arith.constant 0 : index
    %c0_70 = arith.constant 0 : index
    %c0_71 = arith.constant 0 : index
    %74 = vector.load %arg6[%c0_69, %c0_70, %c0_71] : memref<1x384x128xbf16, #tpu.memory_space<vmem>>, vector<1x384x128xbf16>
    %75 = vector.shape_cast %74 : vector<1x384x128xbf16> to vector<384x128xbf16>
    %cst_72 = arith.constant dense<0.000000e+00> : vector<2x128xf32>
    %76 = tpu.matmul %73, %75, %cst_72 {dimension_numbers = #tpu.dot_dimension_numbers<[1], [0], [0], [1], [0, 0, 1, 1], [], []>} : vector<2x384xbf16>, vector<384x128xbf16>, vector<2x128xf32> -> vector<2x128xf32>
    %c0_73 = arith.constant 0 : index
    %c0_74 = arith.constant 0 : index
    %c0_75 = arith.constant 0 : index
    %77 = vector.load %arg10[%c0_73, %c0_74, %c0_75] : memref<1x1x128xf32, #tpu.memory_space<vmem>>, vector<1x1x128xf32>
    %78 = vector.shape_cast %77 : vector<1x1x128xf32> to vector<1x128xf32>
    %79 = vector.broadcast %78 : vector<1x128xf32> to vector<2x128xf32>
    %80 = arith.addf %76, %79 : vector<2x128xf32>
    %cst_76 = arith.constant 2.000000e-01 : f32
    %81 = vector.broadcast %cst_76 : f32 to vector<2x128xf32>
    %82 = arith.mulf %81, %80 : vector<2x128xf32>
    %83 = arith.maximumf %80, %82 : vector<2x128xf32>
    %c0_77 = arith.constant 0 : index
    %c0_78 = arith.constant 0 : index
    %c0_79 = arith.constant 0 : index
    %84 = vector.load %arg15[%c0_77, %c0_78, %c0_79] : memref<1x2x128xf32, #tpu.memory_space<vmem>>, vector<1x2x128xf32>
    %85 = vector.shape_cast %84 : vector<1x2x128xf32> to vector<2x128xf32>
    %86 = arith.mulf %83, %85 : vector<2x128xf32>
    %cst_80 = arith.constant dense<0.000000e+00> : vector<2xf32>
    %87 = vector.multi_reduction <add>, %86, %cst_80 [1] : vector<2x128xf32> to vector<2xf32>
    %88 = vector.shape_cast %87 : vector<2xf32> to vector<2x1xf32>
    %c0_81 = arith.constant 0 : index
    %c0_82 = arith.constant 0 : index
    %c0_83 = arith.constant 0 : index
    %89 = vector.load %arg17[%c0_81, %c0_82, %c0_83] : memref<1x1x1xf32, #tpu.memory_space<vmem>>, vector<1x1x1xf32>
    %90 = vector.shape_cast %89 : vector<1x1x1xf32> to vector<1x1xf32>
    %91 = vector.broadcast %90 : vector<1x1xf32> to vector<2x1xf32>
    %92 = arith.addf %88, %91 : vector<2x1xf32>
    %c0_84 = arith.constant 0 : index
    %c0_85 = arith.constant 0 : index
    %c0_86 = arith.constant 0 : index
    %93 = vector.load %arg18[%c0_84, %c0_85, %c0_86] : memref<1x2x1xf32, #tpu.memory_space<vmem>>, vector<1x2x1xf32>
    %94 = vector.shape_cast %93 : vector<1x2x1xf32> to vector<2x1xf32>
    %95 = vector.shape_cast %92 : vector<2x1xf32> to vector<1x2x1xf32>
    tpu.vector_store %arg18[%c0_84, %c0_85, %c0_86], %95 {strides = array<i32>} : memref<1x2x1xf32, #tpu.memory_space<vmem>>, vector<1x2x1xf32>,
    return
  }
  func.func @transform_0(%arg0: i32, %arg1: i32) -> (i32, i32, i32) {
    %c0_i32 = arith.constant 0 : i32
    %c0_i32_0 = arith.constant 0 : i32
    return %arg0, %arg1, %c0_i32 : i32, i32, i32
  }
  func.func @transform_1(%arg0: i32, %arg1: i32) -> (i32, i32, i32) {
    %c0_i32 = arith.constant 0 : i32
    %c0_i32_0 = arith.constant 0 : i32
    %c0_i32_1 = arith.constant 0 : i32
    return %arg0, %c0_i32, %c0_i32_0 : i32, i32, i32
  }
  func.func @transform_2(%arg0: i32, %arg1: i32) -> (i32, i32, i32) {
    %c0_i32 = arith.constant 0 : i32
    %c0_i32_0 = arith.constant 0 : i32
    %c0_i32_1 = arith.constant 0 : i32
    return %arg0, %c0_i32, %c0_i32_0 : i32, i32, i32
  }
  func.func @transform_3(%arg0: i32, %arg1: i32) -> (i32, i32, i32) {
    %c0_i32 = arith.constant 0 : i32
    %c0_i32_0 = arith.constant 0 : i32
    %c0_i32_1 = arith.constant 0 : i32
    return %arg0, %c0_i32, %c0_i32_0 : i32, i32, i32
  }
  func.func @transform_4(%arg0: i32, %arg1: i32) -> (i32, i32, i32) {
    %c0_i32 = arith.constant 0 : i32
    %c0_i32_0 = arith.constant 0 : i32
    %c0_i32_1 = arith.constant 0 : i32
    return %arg0, %c0_i32, %c0_i32_0 : i32, i32, i32
  }
  func.func @transform_5(%arg0: i32, %arg1: i32) -> (i32, i32, i32) {
    %c0_i32 = arith.constant 0 : i32
    %c0_i32_0 = arith.constant 0 : i32
    %c0_i32_1 = arith.constant 0 : i32
    return %arg0, %c0_i32, %c0_i32_0 : i32, i32, i32
  }
  func.func @transform_6(%arg0: i32, %arg1: i32) -> (i32, i32, i32) {
    %c0_i32 = arith.constant 0 : i32
    %c0_i32_0 = arith.constant 0 : i32
    %c0_i32_1 = arith.constant 0 : i32
    return %arg0, %c0_i32, %c0_i32_0 : i32, i32, i32
  }
  func.func @transform_7(%arg0: i32, %arg1: i32) -> (i32, i32, i32) {
    %c0_i32 = arith.constant 0 : i32
    %c0_i32_0 = arith.constant 0 : i32
    %c0_i32_1 = arith.constant 0 : i32
    return %arg0, %c0_i32, %c0_i32_0 : i32, i32, i32
  }
  func.func @transform_8(%arg0: i32, %arg1: i32) -> (i32, i32, i32) {
    %c0_i32 = arith.constant 0 : i32
    %c0_i32_0 = arith.constant 0 : i32
    %c0_i32_1 = arith.constant 0 : i32
    return %arg0, %c0_i32, %c0_i32_0 : i32, i32, i32
  }
  func.func @transform_9(%arg0: i32, %arg1: i32) -> (i32, i32) {
    %c0_i32 = arith.constant 0 : i32
    %c0_i32_0 = arith.constant 0 : i32
    %c0_i32_1 = arith.constant 0 : i32
    return %c0_i32, %c0_i32_0 : i32, i32
  }
  func.func @transform_10(%arg0: i32, %arg1: i32) -> (i32, i32) {
    %c0_i32 = arith.constant 0 : i32
    %c0_i32_0 = arith.constant 0 : i32
    %c0_i32_1 = arith.constant 0 : i32
    return %c0_i32, %c0_i32_0 : i32, i32
  }
  func.func @transform_11(%arg0: i32, %arg1: i32) -> (i32, i32) {
    %c0_i32 = arith.constant 0 : i32
    %c0_i32_0 = arith.constant 0 : i32
    %c0_i32_1 = arith.constant 0 : i32
    return %c0_i32, %c0_i32_0 : i32, i32
  }
  func.func @transform_12(%arg0: i32, %arg1: i32) -> (i32, i32) {
    %c0_i32 = arith.constant 0 : i32
    %c0_i32_0 = arith.constant 0 : i32
    %c0_i32_1 = arith.constant 0 : i32
    return %c0_i32, %c0_i32_0 : i32, i32
  }
  func.func @transform_13(%arg0: i32, %arg1: i32) -> (i32, i32, i32) {
    %c0_i32 = arith.constant 0 : i32
    %c0_i32_0 = arith.constant 0 : i32
    %c0_i32_1 = arith.constant 0 : i32
    return %arg0, %c0_i32, %c0_i32_0 : i32, i32, i32
  }
  func.func @transform_14(%arg0: i32, %arg1: i32) -> (i32, i32) {
    %c0_i32 = arith.constant 0 : i32
    %c0_i32_0 = arith.constant 0 : i32
    %c0_i32_1 = arith.constant 0 : i32
    return %c0_i32, %c0_i32_0 : i32, i32
  }
  func.func @transform_15(%arg0: i32, %arg1: i32) -> (i32, i32, i32) {
    %c0_i32 = arith.constant 0 : i32
    %c0_i32_0 = arith.constant 0 : i32
    %c0_i32_1 = arith.constant 0 : i32
    return %arg0, %c0_i32, %c0_i32_0 : i32, i32, i32
  }
  func.func @transform_16(%arg0: i32, %arg1: i32) -> (i32, i32, i32) {
    %c0_i32 = arith.constant 0 : i32
    %c0_i32_0 = arith.constant 0 : i32
    return %arg0, %arg1, %c0_i32 : i32, i32, i32
  }
}

</mosaic_0001>

<bundles_post_ra>
// kernel: coupled_discriminators.1
= control target key start
LH: loop header
LB: loop body
LE: loop exit
PB: predicated region body
PF: predicated region fallthrough
CT: control target
= control target key end

     0   :  { %s2698_s21 = smov 0   ;;  %s2700_s22 = smov 0   ;;  %s2947_s0 = inlined_call_operand.vmem [shape: f32[2,40,128], index: 0, kind: input, shape index: {}]   ;;  %s2948_s1 = inlined_call_operand.vmem [shape: bf16[2,384,128], index: 1, kind: input, shape index: {}]   ;;  %s2949_s2 = inlined_call_operand.vmem [shape: bf16[2,384,128], index: 2, kind: input, shape index: {}]   ;;  %s2950_s3 = inlined_call_operand.vmem [shape: bf16[2,384,128], index: 3, kind: input, shape index: {}]   ;;  %s2951_s4 = inlined_call_operand.vmem [shape: bf16[2,384,128], index: 4, kind: input, shape index: {}]   ;;  %s2952_s5 = inlined_call_operand.vmem [shape: f32[2,1,128], index: 5, kind: input, shape index: {}]   ;;  %s2953_s6 = inlined_call_operand.vmem [shape: f32[2,1,128], index: 6, kind: input, shape index: {}]   ;;  %s2954_s7 = inlined_call_operand.vmem [shape: f32[2,1,128], index: 7, kind: input, shape index: {}]   ;;  %s2955_s8 = inlined_call_operand.vmem [shape: f32[2,1,128], index: 8, kind: input, shape index: {}]   ;;  %s2956_s9 = inlined_call_operand.vmem [shape: f32[16,1], index: 9, kind: input, shape index: {}]   ;;  %s2957_s10 = inlined_call_operand.vmem [shape: f32[8,1], index: 10, kind: input, shape index: {}]   ;;  %s2958_s11 = inlined_call_operand.vmem [shape: f32[4,1], index: 11, kind: input, shape index: {}]   ;;  %s2959_s12 = inlined_call_operand.vmem [shape: f32[2,1], index: 12, kind: input, shape index: {}]   ;;  %s2960_s13 = inlined_call_operand.vmem [shape: f32[2,2,128], index: 13, kind: input, shape index: {}]   ;;  %s2961_s14 = inlined_call_operand.vmem [shape: f32[2,2], index: 14, kind: input, shape index: {}]   ;;  %s2962_s15 = inlined_call_operand.vmem [shape: f32[2,1,1], index: 15, kind: input, shape index: {}]   ;;  %s2963_s16 = inlined_call_operand.vmem [shape: f32[2,2,1], index: 16, kind: output, shape index: {}]  }
   0x1   :  { %2964 = sst [smem:[#allocation5_spill]] %s2947_s0  ;;  %s2702_s23 = smov 0  }
   0x2 LB: > { %s38_s14 = sadd.s32 1, %s2604_s22  ;;  %p2138_p0 = scmp.ge.s32.totalorder %s2608_s23, 1  ;;  %s2608_s23 = sphi %s2702_s23, %s26_s23   ;;  %s2604_s22 = sphi %s2700_s22, %s2967_s22   ;;  %s2600_s21 = sphi %s2698_s21, %s2966_s21  }
   0x3   : > { %p40_p1 = scmp.ge.s32.totalorder %s38_s14, 2  ;;  %p572_p2 = scmp.lt.s32.totalorder %s2608_s23, 3 }
   0x5   : > { %s2969_s14 = smov (%p40_p1, %s38_s14), 0  ;;  %p573_p3 = pnand %p2138_p0, %p572_p2 }
   0x6   : > { %v728_v0 = vld [vmem:[%s2956_s9] sm:$0xff] (!%p573_p3)  ;;  %p668_p4 = scmp.lt.s32.totalorder (!%p573_p3), %s2600_s21, 1  ;;  %v2610_v1 = vmov (!%p573_p3), 0   ;;  %v2611_v2 = vmov (!%p573_p3), 0.0   ;;  %v729_v3 = vld [vmem:[%s2956_s9 + $0x8] sm:$0xff] (!%p573_p3)  ;;  %vm2612_vm0 = vmmov (!%p573_p3), 0  }
   0x7   : > { %576 = sbr.rel (%p573_p3) target bundleno = 1225 (0x4c9), region = 84  ;;  %2488 = vset.pattern.permute.xlu0 (!%p573_p3), %v2610_v1  ;;  %2489 = vset.pattern.permute.xlu1 (!%p573_p3), %v2610_v1  ;;  %1038 = vst [vmem:[#allocation2] sm:$0xff] (!%p573_p3), %v2611_v2  ;;  %1338 = vst [vmem:[#allocation3] sm:$0xff] (!%p573_p3), %v2611_v2  ;;  %v1641_v4 = vld [vmem:[%s2959_s12] sm:$0x3] (!%p573_p3)  ;;  %s2965_s25 = sld [smem:[#allocation5_spill]] (!%p573_p3) }
   0x8   : > { %732 = vperm.xlu0 (!%p573_p3), %2488, %v728_v0   ;;  %2379 = vmatprep.subr.bf16.mxu1 (!%p573_p3), %v2611_v2  ;;  %1637 = vst [vmem:[#allocation4] sm:$0xff] (!%p573_p3), %v2611_v2  ;;  %v1043_v33 = vld [vmem:[%s2957_s10] sm:$0xff] (!%p573_p3)  ;;  %vm1938_vm1 = vcmask (!%p573_p3), 1041408   ;;  %vm1950_vm2 = vcmask (!%p573_p3), 1024  }
   0x9   : > { %2395 = vmatprep.mubr.msk.bf16.mxu1 (!%p573_p3), %vm2612_vm0, %v2611_v2  ;;  %1046 = vperm.xlu1 (!%p573_p3), %2489, %v1043_v33   ;;  %v1342_v36 = vld [vmem:[%s2958_s11] sm:$0xf] (!%p573_p3) }
   0xc   : > { %737 = vperm.xlu0 (!%p573_p3), %2488, %v729_v3  }
   0xd   : > { %1345 = vperm.xlu1 (!%p573_p3), %2489, %v1342_v36  }
   0xe   : > { %s2971_s21 = smov (!%p668_p4, %s2600_s21), 1 }
   0xf   : > { %s2729_s28 = smul.u32 192, %s2971_s21  ;;  %s699_s29 = scalar_lea.vmem %s2952_s5, %s2971_s21 }
  0x10   : > { %1644 = vperm.xlu0 %2488, %v1641_v4   ;;  %s2459_s19 = smul.u32 40, %s2971_s21 }
  0x11   : > { %s2738_s18 = scalar_lea.vmem %s2948_s1, %s2729_s28  ;;  %s2783_s30 = scalar_lea.vmem %s2949_s2, %s2729_s28 }
  0x12   : > { %v2490_v5 = vld [vmem:[%s2738_s18 + $0x40] sm:$0xff]   ;;  %v2493_v8 = vld [vmem:[%s2738_s18 + $0x48] sm:$0xff]   ;;  %v2496_v11 = vld [vmem:[%s2738_s18 + $0x50] sm:$0xff]   ;;  %s2771_s26 = scalar_lea.vmem %s2965_s25, %s2459_s19  ;;  %s2836_s25 = scalar_lea.vmem %s2950_s3, %s2729_s28 }
  0x13   : > { %v2491_v6 = vld [vmem:[%s2738_s18] sm:$0xff]   ;;  %2255 = vmatprep.subr.bf16.mxu0 %v2490_v5  ;;  %v2494_v9 = vld [vmem:[%s2738_s18 + $0x8] sm:$0xff]   ;;  %v2497_v12 = vld [vmem:[%s2738_s18 + $0x10] sm:$0xff]   ;;  %s2880_s17 = scalar_lea.vmem %s2951_s4, %s2729_s28  ;;  %s715_s28 = scalar_lea.vmem %s2962_s15, %s2971_s21 }
  0x14   : > { %v2492_v7 = vld [vmem:[%s2738_s18 + $0x80] sm:$0xff]   ;;  %2256 = vmatpush3.bf16.msra.mxu0 %v2491_v6  ;;  %v2495_v10 = vld [vmem:[%s2738_s18 + $0x88] sm:$0xff]   ;;  %v2498_v13 = vld [vmem:[%s2738_s18 + $0x90] sm:$0xff]  }
  0x15   : > { %2380 = vmatpush3.bf16.msra.mxu1 %v2492_v7  ;;  %2257 = vmatprep.subr.bf16.mxu0 %v2493_v8  ;;  %v2499_v14 = vld [vmem:[%s2738_s18 + $0x58] sm:$0xff]   ;;  %v2502_v17 = vld [vmem:[%s2738_s18 + $0x60] sm:$0xff]   ;;  %v2505_v20 = vld [vmem:[%s2738_s18 + $0x68] sm:$0xff]  }
  0x16   : > { %2381 = vmatprep.subr.bf16.mxu1 %v2611_v2  ;;  %v2500_v15 = vld [vmem:[%s2738_s18 + $0x18] sm:$0xff]   ;;  %v2503_v18 = vld [vmem:[%s2738_s18 + $0x20] sm:$0xff]   ;;  %v2506_v21 = vld [vmem:[%s2738_s18 + $0x28] sm:$0xff]  }
  0x17   : > { %v2501_v16 = vld [vmem:[%s2738_s18 + $0x98] sm:$0xff]   ;;  %v2504_v19 = vld [vmem:[%s2738_s18 + $0xa0] sm:$0xff]   ;;  %v2507_v22 = vld [vmem:[%s2738_s18 + $0xa8] sm:$0xff]  }
  0x18   : > { %2258 = vmatpush3.bf16.msra.mxu0 %v2494_v9  ;;  %v2508_v23 = vld [vmem:[%s2738_s18 + $0x70] sm:$0xff]   ;;  %v2511_v26 = vld [vmem:[%s2738_s18 + $0x78] sm:$0xff]   ;;  %v2515_v35 = vld [vmem:[%s2783_s30 + $0x40] sm:$0xff]  }
  0x19   : > { %2382 = vmatpush3.bf16.msra.mxu1 %v2495_v10  ;;  %2259 = vmatprep.subr.bf16.mxu0 %v2496_v11  ;;  %v2509_v24 = vld [vmem:[%s2738_s18 + $0x30] sm:$0xff]   ;;  %v2149_v28 = vld [vmem:[%s2771_s26 + $0x18] ss:$2 sm:$0xff]  ;;  %v2151_v34 = vld [vmem:[%s2771_s26 + $0x19] ss:$2 sm:$0xff] }
  0x1a   : > { %2383 = vmatprep.subr.bf16.mxu1 %v2611_v2  ;;  %v2510_v25 = vld [vmem:[%s2738_s18 + $0xb0] sm:$0xff]   ;;  %v2512_v29 = vld [vmem:[%s2738_s18 + $0x38] sm:$0xff]   ;;  %v2514_v38 = vld [vmem:[%s2783_s30 + $0x80] sm:$0xff]  }
  0x1b   : > { %v2148_v27 = vld [vmem:[%s2771_s26 + $0x8] ss:$2 sm:$0xff]  ;;  %v2513_v31 = vld [vmem:[%s2738_s18 + $0xb8] sm:$0xff]   ;;  %v2150_v32 = vld [vmem:[%s2771_s26 + $0x9] ss:$2 sm:$0xff]  ;;  %s702_s18 = scalar_lea.vmem %s2953_s6, %s2971_s21 }
  0x1c   : > { %2260 = vmatpush3.bf16.msra.mxu0 %v2497_v12  ;;  %v751_v30 = vpack.c.bf16 %v2149_v28, %v2148_v27  ;;  %v752_v37 = vpack.c.bf16 %v2151_v34, %v2150_v32  ;;  %v2517_v39 = vld [vmem:[%s2783_s30 + $0x88] sm:$0xff]   ;;  %v2147_v42 = vld [vmem:[%s2771_s26 + $0x17] ss:$2 sm:$0xff]  ;;  %v2152_v12 = vld [vmem:[%s699_s29] ss:$0 sm:$0xff]  ;;  %s708_s29 = scalar_lea.vmem %s2955_s8, %s2971_s21 }
  0x1d   : > { %2384 = vmatpush3.bf16.msra.mxu1 %v2498_v13  ;;  %2261 = vmatprep.subr.bf16.mxu0 %v2499_v14  ;;  %v2146_v41 = vld [vmem:[%s2771_s26 + $0x7] ss:$2 sm:$0xff]  ;;  %v2523_v53 = vld [vmem:[%s2783_s30 + $0x98] sm:$0xff]  }
  0x1e   : > { %2385 = vmatprep.subr.bf16.mxu1 %v2611_v2  ;;  %984 = vmatprep.mubr.bf16.mxu0 %v751_v30  ;;  %v2516_v46 = vld [vmem:[%s2783_s30] sm:$0xff]   ;;  %v2518_v48 = vld [vmem:[%s2783_s30 + $0x48] sm:$0xff]   ;;  %v2520_v50 = vld [vmem:[%s2783_s30 + $0x90] sm:$0xff]  }
  0x1f   : > { %v2519_v49 = vld [vmem:[%s2783_s30 + $0x8] sm:$0xff]   ;;  %v2521_v51 = vld [vmem:[%s2783_s30 + $0x50] sm:$0xff]   ;;  %v2524_v54 = vld [vmem:[%s2783_s30 + $0x58] sm:$0xff]  }
  0x20   : > { %2262 = vmatpush3.bf16.msra.mxu0 %v2500_v15  ;;  %v2522_v52 = vld [vmem:[%s2783_s30 + $0x10] sm:$0xff]   ;;  %v2525_v55 = vld [vmem:[%s2783_s30 + $0x18] sm:$0xff]   ;;  %v2526_v56 = vld [vmem:[%s2783_s30 + $0xa0] sm:$0xff]  }
  0x21   : > { %2386 = vmatpush3.bf16.msra.mxu1 %v2501_v16  ;;  %2263 = vmatprep.subr.bf16.mxu0 %v2502_v17  ;;  %v2527_v57 = vld [vmem:[%s2783_s30 + $0x60] sm:$0xff]   ;;  %v2529_v59 = vld [vmem:[%s2783_s30 + $0xa8] sm:$0xff]   ;;  %v2532_v62 = vld [vmem:[%s2783_s30 + $0xb0] sm:$0xff]  }
  0x22   : > { %2387 = vmatprep.subr.bf16.mxu1 %v2611_v2  ;;  %v2528_v58 = vld [vmem:[%s2783_s30 + $0x20] sm:$0xff]   ;;  %v2530_v60 = vld [vmem:[%s2783_s30 + $0x68] sm:$0xff]   ;;  %v2533_v63 = vld [vmem:[%s2783_s30 + $0x70] sm:$0xff]  }
  0x23   : > { %v2531_v61 = vld [vmem:[%s2783_s30 + $0x28] sm:$0xff]   ;;  %v2534_v0 = vld [vmem:[%s2783_s30 + $0x30] sm:$0xff]   ;;  %v2535_v1 = vld [vmem:[%s2783_s30 + $0xb8] sm:$0xff]  }
  0x24   : > { %2264 = vmatpush3.bf16.msra.mxu0 %v2503_v18  ;;  %v2536_v3 = vld [vmem:[%s2783_s30 + $0x78] sm:$0xff]   ;;  %v2539_v5 = vld [vmem:[%s2836_s25 + $0x40] sm:$0xff]   ;;  %v2541_v36 = vld [vmem:[%s2836_s25 + $0x88] sm:$0xff]  }
  0x25   : > { %2388 = vmatpush3.bf16.msra.mxu1 %v2504_v19  ;;  %2265 = vmatprep.subr.bf16.mxu0 %v2505_v20  ;;  %v2537_v4 = vld [vmem:[%s2783_s30 + $0x38] sm:$0xff]   ;;  %v2540_v33 = vld [vmem:[%s2836_s25] sm:$0xff]   ;;  %s2144_s30 = sshll.u32 %s2971_s21, 1 }
  0x26   : > { %2389 = vmatprep.subr.bf16.mxu1 %v2611_v2  ;;  %s712_s19 = scalar_lea.vmem %s2960_s13, %s2144_s30  ;;  %s722_s26 = scalar_lea.vmem %s2963_s16, %s2144_s30 }
  0x28   : > { %2266 = vmatpush3.bf16.msra.mxu0 %v2506_v21 }
  0x29   : > { %2390 = vmatpush3.bf16.msra.mxu1 %v2507_v22  ;;  %2267 = vmatprep.subr.bf16.mxu0 %v2508_v23 }
  0x2a   : > { %2391 = vmatprep.subr.bf16.mxu1 %v2611_v2 }
  0x2c   : > { %2268 = vmatpush3.bf16.msra.mxu0 %v2509_v24 }
  0x2d   : > { %2392 = vmatpush3.bf16.msra.mxu1 %v2510_v25  ;;  %2269 = vmatprep.subr.bf16.mxu0 %v2511_v26  ;;  %v2538_v25 = vld [vmem:[%s2836_s25 + $0x80] sm:$0xff]  }
  0x2e   : > { %2393 = vmatprep.subr.bf16.mxu1 %v2611_v2 }
  0x30   : > { %2270 = vmatpush3.bf16.msra.mxu0 %v2512_v29 }
  0x31   : > { %2394 = vmatpush3.bf16.msra.mxu1 %v2513_v31  ;;  %2286 = vmatprep.subr.bf16.mxu0 %v2515_v35  ;;  %v2542_v35 = vld [vmem:[%s2836_s25 + $0x48] sm:$0xff]  }
  0x32   : > { %2399 = vmatprep.subr.bf16.mxu1 %v2611_v2 }
  0x34   : > { %2396 = vmatmul.mubr.bf16.vlgmr.msra.gmra.mrb[0].mxu1 %v752_v37  ;;  %v2543_v37 = vld [vmem:[%s2836_s25 + $0x8] sm:$0xff]  }
  0x35   : > { %2400 = vmatpush3.bf16.msra.mxu1 %v2514_v38  ;;  %2415 = vmatprep.mubr.msk.bf16.mxu1 %vm2612_vm0, %v2611_v2  ;;  %v2544_v38 = vld [vmem:[%s2836_s25 + $0x90] sm:$0xff]  }
  0x36   : > { %2401 = vmatprep.subr.bf16.mxu1 %v2611_v2 }
  0x39   : > { %2402 = vmatpush3.bf16.msra.mxu1 %v2517_v39  ;;  %v2545_v39 = vld [vmem:[%s2836_s25 + $0x50] sm:$0xff]  }
  0x3a   : > { %2403 = vmatprep.subr.bf16.mxu1 %v2611_v2 }
  0x3d   : > { %2404 = vmatpush3.bf16.msra.mxu1 %v2520_v50  ;;  %v2556_v50 = vld [vmem:[%s2836_s25 + $0xb0] sm:$0xff]  }
  0x3e   : > { %2405 = vmatprep.subr.bf16.mxu1 %v2611_v2 }
  0x41   : > { %2406 = vmatpush3.bf16.msra.mxu1 %v2523_v53  ;;  %v2560_v53 = vld [vmem:[%s2836_s25 + $0x78] sm:$0xff]  }
  0x42   : > { %2407 = vmatprep.subr.bf16.mxu1 %v2611_v2 }
  0x45   : > { %2408 = vmatpush3.bf16.msra.mxu1 %v2526_v56  ;;  %v2563_v56 = vld [vmem:[%s2880_s17 + $0x40] sm:$0xff]  }
  0x46   : > { %2409 = vmatprep.subr.bf16.mxu1 %v2611_v2 }
  0x49   : > { %2410 = vmatpush3.bf16.msra.mxu1 %v2529_v59 }
  0x4a   : > { %2411 = vmatprep.subr.bf16.mxu1 %v2611_v2 }
  0x4d   : > { %2412 = vmatpush3.bf16.msra.mxu1 %v2532_v62 }
  0x4e   : > { %2413 = vmatprep.subr.bf16.mxu1 %v2611_v2 }
  0x51   : > { %2414 = vmatpush3.bf16.msra.mxu1 %v2535_v1 }
  0x52   : > { %2419 = vmatprep.subr.bf16.mxu1 %v2611_v2 }
  0x87   : > { %v733_v40 = vpop.permute.xlu0 %732 }
  0x88   : > { %v740_v44 = vmul.f32 %v2146_v41, %v733_v40  ;;  %v1047_v26 = vpop.permute.xlu1 %1046  ;;  %v2546_v40 = vld [vmem:[%s2836_s25 + $0x10] sm:$0xff]   ;;  %v2547_v41 = vld [vmem:[%s2836_s25 + $0x98] sm:$0xff]  }
  0x8b   : > { %v738_v43 = vpop.permute.xlu0 %737 }
  0x8c   : > { %v741_v45 = vmul.f32 %v2147_v42, %v738_v43  ;;  %v2548_v42 = vld [vmem:[%s2836_s25 + $0x58] sm:$0xff]  }
  0x8d   : > { %v2549_v43 = vld [vmem:[%s2836_s25 + $0x18] sm:$0xff]  }
  0x8e   : > { %v750_v47 = vpack.c.bf16 %v741_v45, %v740_v44  ;;  %v2550_v44 = vld [vmem:[%s2836_s25 + $0xa0] sm:$0xff]  }
  0x8f   : > { %v2551_v45 = vld [vmem:[%s2836_s25 + $0x60] sm:$0xff]  }
  0x90   : > { %985 = vmatmul.mubr.bf16.vlgmr.msra.gmra.mrb[0].mxu0 %v750_v47  ;;  %v2553_v47 = vld [vmem:[%s2836_s25 + $0xa8] sm:$0xff]  }
  0x91   : > { %2287 = vmatpush3.bf16.msra.mxu0 %v2516_v46  ;;  %v2552_v46 = vld [vmem:[%s2836_s25 + $0x20] sm:$0xff]  }
  0x92   : > { %2288 = vmatprep.subr.bf16.mxu0 %v2518_v48  ;;  %v2554_v48 = vld [vmem:[%s2836_s25 + $0x68] sm:$0xff]  }
  0x95   : > { %2289 = vmatpush3.bf16.msra.mxu0 %v2519_v49  ;;  %v2555_v49 = vld [vmem:[%s2836_s25 + $0x28] sm:$0xff]  }
  0x96   : > { %2290 = vmatprep.subr.bf16.mxu0 %v2521_v51  ;;  %v2557_v51 = vld [vmem:[%s2836_s25 + $0x70] sm:$0xff]  }
  0x99   : > { %2291 = vmatpush3.bf16.msra.mxu0 %v2522_v52  ;;  %v2558_v52 = vld [vmem:[%s2836_s25 + $0x30] sm:$0xff]  }
  0x9a   : > { %2292 = vmatprep.subr.bf16.mxu0 %v2524_v54  ;;  %v2559_v54 = vld [vmem:[%s2836_s25 + $0xb8] sm:$0xff]  }
  0x9d   : > { %2293 = vmatpush3.bf16.msra.mxu0 %v2525_v55  ;;  %v2561_v55 = vld [vmem:[%s2836_s25 + $0x38] sm:$0xff]   ;;  %s705_s25 = scalar_lea.vmem %s2954_s7, %s2971_s21 }
  0x9e   : > { %2294 = vmatprep.subr.bf16.mxu0 %v2527_v57 }
  0xa1   : > { %2295 = vmatpush3.bf16.msra.mxu0 %v2528_v58 }
  0xa2   : > { %2296 = vmatprep.subr.bf16.mxu0 %v2530_v60 }
  0xa5   : > { %2297 = vmatpush3.bf16.msra.mxu0 %v2531_v61  ;;  %v2177_v61 = vld [vmem:[%s702_s18] ss:$0 sm:$0xff] }
  0xa6   : > { %2298 = vmatprep.subr.bf16.mxu0 %v2533_v63 }
  0xa9   : > { %2299 = vmatpush3.bf16.msra.mxu0 %v2534_v0 }
  0xaa   : > { %2300 = vmatprep.subr.bf16.mxu0 %v2536_v3 }
  0xad   : > { %2301 = vmatpush3.bf16.msra.mxu0 %v2537_v4 }
  0xae   : > { %2317 = vmatprep.subr.bf16.mxu0 %v2539_v5 }
 0x107   : > { %v1027_v6 = vpop.f32.mrb[0].mxu1 }
 0x108   : > { %v2397_v7 = vpop.f32.mrb[1].mxu1 }
 0x109   : > { %v1030_v8 = vpop.f32.mrb[2].mxu1 }
 0x10a   : > { %v2398_v9 = vpop.f32.mrb[3].mxu1 }
 0x163   : > { %v2271_v10 = vpop.f32.mrb[0].mxu0 }
 0x164   : > { %v2272_v11 = vpop.f32.mrb[1].mxu0 }
 0x165   : > { %v2273_v13 = vadd.f32 %v2272_v11, %v2271_v10  ;;  %v2274_v14 = vpop.f32.mrb[2].mxu0  ;;  %v1346_v11 = vpop.permute.xlu1 %1345 }
 0x166   : > { %v2275_v15 = vpop.f32.mrb[3].mxu0 }
 0x167   : > { %v987_v16 = vadd.f32 %v2273_v13, %v2152_v12  ;;  %v2276_v17 = vadd.f32 %v2275_v15, %v2274_v14 }
 0x169   : > { %v1028_v18 = vadd.f32 %v1027_v6, %v987_v16  ;;  %v990_v19 = vadd.f32 %v2276_v17, %v2152_v12  ;;  %v2564_v16 = vld [vmem:[%s2880_s17] sm:$0xff]  }
 0x16b   : > { %v1034_v20 = vmul.f32 0.2, %v1028_v18  ;;  %v1031_v21 = vadd.f32 %v1030_v8, %v990_v19  ;;  %v2562_v8 = vld [vmem:[%s2880_s17 + $0x80] sm:$0xff]   ;;  %v2566_v19 = vld [vmem:[%s2880_s17 + $0x48] sm:$0xff]  }
 0x16d   : > { %v1036_v22 = vmax.f32 %v1028_v18, %v1034_v20  ;;  %v1035_v23 = vmul.f32 0.2, %v1031_v21  ;;  %v2565_v18 = vld [vmem:[%s2880_s17 + $0x88] sm:$0xff]  }
 0x16e   : > { %v2567_v20 = vld [vmem:[%s2880_s17 + $0x8] sm:$0xff]  }
 0x16f   : > { %1039 = vst [vmem:[#allocation2 + $0x8] sm:$0xff] %v1036_v22  ;;  %v1037_v24 = vmax.f32 %v1031_v21, %v1035_v23  ;;  %v2568_v21 = vld [vmem:[%s2880_s17 + $0x90] sm:$0xff]  }
 0x170   : > { %v2569_v22 = vld [vmem:[%s2880_s17 + $0x50] sm:$0xff]  }
 0x171   : > { %1040 = vst [vmem:[#allocation2 + $0x10] sm:$0xff] %v1037_v24  ;;  %v2570_v23 = vld [vmem:[%s2880_s17 + $0x10] sm:$0xff]   ;;  %v2571_v24 = vld [vmem:[%s2880_s17 + $0x98] sm:$0xff]  }
 0x178   : > { %v1042_v27 = vld [vmem:[#allocation2 + $0x7] ss:$2 sm:$0xff]  ;;  %v1051_v28 = vld [vmem:[#allocation2 + $0x8] ss:$2 sm:$0xff] }
 0x179   : > { %v1053_v29 = vld [vmem:[#allocation2 + $0x9] ss:$2 sm:$0xff]  ;;  %v1049_v30 = vmul.f32 %v1047_v26, %v1042_v27  ;;  %v1055_v31 = vpack.c.bf16 %v1051_v28, %v1051_v28  ;;  %v2573_v26 = vld [vmem:[%s2880_s17 + $0x18] sm:$0xff]   ;;  %v2574_v27 = vld [vmem:[%s2880_s17 + $0xa0] sm:$0xff]  }
 0x17a   : > { %v1056_v32 = vpack.c.bf16 %v1053_v29, %v1053_v29  ;;  %v2575_v28 = vld [vmem:[%s2880_s17 + $0x60] sm:$0xff]  }
 0x17b   : > { %v1054_v34 = vpack.c.bf16 %v1049_v30, %v1049_v30  ;;  %1288 = vmatprep.mubr.bf16.mxu0 %v1055_v31  ;;  %v2576_v29 = vld [vmem:[%s2880_s17 + $0x20] sm:$0xff]   ;;  %v2577_v30 = vld [vmem:[%s2880_s17 + $0xa8] sm:$0xff]  }
 0x17c   : > { %2416 = vmatmul.mubr.bf16.vlgmr.msra.gmra.mrb[4].mxu1 %v1056_v32  ;;  %v2578_v31 = vld [vmem:[%s2880_s17 + $0x68] sm:$0xff]  }
 0x17d   : > { %2420 = vmatpush3.bf16.msra.mxu1 %v2538_v25  ;;  %2435 = vmatprep.mubr.msk.bf16.mxu1 %vm2612_vm0, %v2611_v2  ;;  %v2572_v25 = vld [vmem:[%s2880_s17 + $0x58] sm:$0xff]   ;;  %v2579_v32 = vld [vmem:[%s2880_s17 + $0x28] sm:$0xff]  }
 0x17e   : > { %1289 = vmatmul.mubr.bf16.vlgmr.msra.gmra.mrb[4].mxu0 %v1054_v34  ;;  %2421 = vmatprep.subr.bf16.mxu1 %v2611_v2  ;;  %v2581_v34 = vld [vmem:[%s2880_s17 + $0x70] sm:$0xff]  }
 0x17f   : > { %2318 = vmatpush3.bf16.msra.mxu0 %v2540_v33  ;;  %v2580_v33 = vld [vmem:[%s2880_s17 + $0xb0] sm:$0xff]  }
 0x180   : > { %2319 = vmatprep.subr.bf16.mxu0 %v2542_v35  ;;  %v2582_v35 = vld [vmem:[%s2880_s17 + $0x30] sm:$0xff]  }
 0x181   : > { %2422 = vmatpush3.bf16.msra.mxu1 %v2541_v36  ;;  %v2584_v36 = vld [vmem:[%s2880_s17 + $0x78] sm:$0xff]  }
 0x182   : > { %2423 = vmatprep.subr.bf16.mxu1 %v2611_v2 }
 0x183   : > { %2320 = vmatpush3.bf16.msra.mxu0 %v2543_v37  ;;  %v2583_v37 = vld [vmem:[%s2880_s17 + $0xb8] sm:$0xff]  }
 0x184   : > { %2321 = vmatprep.subr.bf16.mxu0 %v2545_v39 }
 0x185   : > { %2424 = vmatpush3.bf16.msra.mxu1 %v2544_v38  ;;  %v2585_v38 = vld [vmem:[%s2880_s17 + $0x38] sm:$0xff]  }
 0x186   : > { %2425 = vmatprep.subr.bf16.mxu1 %v2611_v2 }
 0x187   : > { %2322 = vmatpush3.bf16.msra.mxu0 %v2546_v40 }
 0x188   : > { %2323 = vmatprep.subr.bf16.mxu0 %v2548_v42 }
 0x189   : > { %2426 = vmatpush3.bf16.msra.mxu1 %v2547_v41 }
 0x18a   : > { %2427 = vmatprep.subr.bf16.mxu1 %v2611_v2 }
 0x18b   : > { %2324 = vmatpush3.bf16.msra.mxu0 %v2549_v43 }
 0x18c   : > { %2325 = vmatprep.subr.bf16.mxu0 %v2551_v45 }
 0x18d   : > { %2428 = vmatpush3.bf16.msra.mxu1 %v2550_v44  ;;  %v2202_v44 = vld [vmem:[%s705_s25] ss:$0 sm:$0xff] }
 0x18e   : > { %2429 = vmatprep.subr.bf16.mxu1 %v2611_v2 }
 0x18f   : > { %2326 = vmatpush3.bf16.msra.mxu0 %v2552_v46 }
 0x190   : > { %2327 = vmatprep.subr.bf16.mxu0 %v2554_v48 }
 0x191   : > { %2430 = vmatpush3.bf16.msra.mxu1 %v2553_v47 }
 0x192   : > { %2431 = vmatprep.subr.bf16.mxu1 %v2611_v2 }
 0x193   : > { %2328 = vmatpush3.bf16.msra.mxu0 %v2555_v49 }
 0x194   : > { %2329 = vmatprep.subr.bf16.mxu0 %v2557_v51 }
 0x195   : > { %2432 = vmatpush3.bf16.msra.mxu1 %v2556_v50 }
 0x196   : > { %2433 = vmatprep.subr.bf16.mxu1 %v2611_v2 }
 0x197   : > { %2330 = vmatpush3.bf16.msra.mxu0 %v2558_v52 }
 0x198   : > { %2331 = vmatprep.subr.bf16.mxu0 %v2560_v53 }
 0x199   : > { %2434 = vmatpush3.bf16.msra.mxu1 %v2559_v54  ;;  %v1645_v54 = vpop.permute.xlu0 %1644 }
 0x19a   : > { %2439 = vmatprep.subr.bf16.mxu1 %v2611_v2 }
 0x19b   : > { %2332 = vmatpush3.bf16.msra.mxu0 %v2561_v55 }
 0x19c   : > { %2348 = vmatprep.subr.bf16.mxu0 %v2563_v56 }
 0x24f   : > { %v1330_v57 = vpop.f32.mrb[4].mxu1 }
 0x250   : > { %v2417_v58 = vpop.f32.mrb[5].mxu1 }
 0x251   : > { %v2302_v59 = vpop.f32.mrb[4].mxu0  ;;  %v1333_v60 = vpop.f32.mrb[6].mxu1 }
 0x252   : > { %v2303_v62 = vpop.f32.mrb[5].mxu0  ;;  %v2418_v63 = vpop.f32.mrb[7].mxu1 }
 0x253   : > { %v2304_v0 = vadd.f32 %v2303_v62, %v2302_v59  ;;  %v2305_v1 = vpop.f32.mrb[6].mxu0 }
 0x254   : > { %v2306_v3 = vpop.f32.mrb[7].mxu0  ;;  %v2227_v1 = vld [vmem:[%s708_s29] ss:$0 sm:$0xff] }
 0x255   : > { %v1291_v4 = vadd.f32 %v2304_v0, %v2177_v61 }
 0x257   : > { %v1331_v5 = vadd.f32 %v1330_v57, %v1291_v4 }
 0x259   : > { %v1336_v6 = vmul.f32 0.2, %v1331_v5 }
 0x25b   : > { %v1337_v7 = vmax.f32 %v1331_v5, %v1336_v6 }
 0x25d   : > { %1339 = vst [vmem:[#allocation3 + $0x8] sm:$0xff] %v1337_v7 }
 0x264   : > { %v1350_v9 = vld [vmem:[#allocation3 + $0x8] ss:$2 sm:$0xf]  ;;  %v1352_v10 = vld [vmem:[#allocation3 + $0x9] ss:$2 sm:$0xf] }
 0x265   : > { %v1354_v12 = vpack.c.bf16 %v1350_v9, %v1350_v9  ;;  %v1355_v13 = vpack.c.bf16 %v1352_v10, %v1352_v10  ;;  %v1341_v14 = vld [vmem:[#allocation3 + $0x7] ss:$2 sm:$0xf] }
 0x266   : > { %v1348_v15 = vmul.f32 %v1346_v11, %v1341_v14  ;;  %v1936_v10 = vld [vmem:[%s712_s19] sm:$0x3] }
 0x267   : > { %1587 = vmatprep.mubr.bf16.mxu0 %v1354_v12  ;;  %2436 = vmatmul.mubr.bf16.vlgmr.msra.gmra.mrb[8].mxu1 %v1355_v13  ;;  %v2252_v14 = vld [vmem:[%s715_s28] ss:$0 sm:$0xff] }
 0x268   : > { %v1353_v17 = vpack.c.bf16 %v1348_v15, %v1348_v15  ;;  %2440 = vmatpush3.bf16.msra.mxu1 %v2562_v8  ;;  %2455 = vmatprep.mubr.msk.bf16.mxu1 %vm2612_vm0, %v2611_v2 }
 0x269   : > { %2441 = vmatprep.subr.bf16.mxu1 %v2611_v2 }
 0x26a   : > { %1588 = vmatmul.mubr.bf16.vlgmr.msra.gmra.mrb[8].mxu0 %v1353_v17 }
 0x26b   : > { %2349 = vmatpush3.bf16.msra.mxu0 %v2564_v16 }
 0x26c   : > { %2442 = vmatpush3.bf16.msra.mxu1 %v2565_v18  ;;  %2350 = vmatprep.subr.bf16.mxu0 %v2566_v19 }
 0x26d   : > { %2443 = vmatprep.subr.bf16.mxu1 %v2611_v2 }
 0x26f   : > { %2351 = vmatpush3.bf16.msra.mxu0 %v2567_v20 }
 0x270   : > { %2444 = vmatpush3.bf16.msra.mxu1 %v2568_v21  ;;  %2352 = vmatprep.subr.bf16.mxu0 %v2569_v22 }
 0x271   : > { %2445 = vmatprep.subr.bf16.mxu1 %v2611_v2 }
 0x273   : > { %2353 = vmatpush3.bf16.msra.mxu0 %v2570_v23 }
 0x274   : > { %2446 = vmatpush3.bf16.msra.mxu1 %v2571_v24  ;;  %2354 = vmatprep.subr.bf16.mxu0 %v2572_v25 }
 0x275   : > { %2447 = vmatprep.subr.bf16.mxu1 %v2611_v2 }
 0x277   : > { %2355 = vmatpush3.bf16.msra.mxu0 %v2573_v26 }
 0x278   : > { %2448 = vmatpush3.bf16.msra.mxu1 %v2574_v27  ;;  %2356 = vmatprep.subr.bf16.mxu0 %v2575_v28 }
 0x279   : > { %2449 = vmatprep.subr.bf16.mxu1 %v2611_v2 }
 0x27b   : > { %2357 = vmatpush3.bf16.msra.mxu0 %v2576_v29 }
 0x27c   : > { %2450 = vmatpush3.bf16.msra.mxu1 %v2577_v30  ;;  %2358 = vmatprep.subr.bf16.mxu0 %v2578_v31 }
 0x27d   : > { %2451 = vmatprep.subr.bf16.mxu1 %v2611_v2 }
 0x27f   : > { %2359 = vmatpush3.bf16.msra.mxu0 %v2579_v32 }
 0x280   : > { %2360 = vmatprep.subr.bf16.mxu0 %v2581_v34  ;;  %2452 = vmatpush3.bf16.msra.mxu1 %v2580_v33 }
 0x281   : > { %2453 = vmatprep.subr.bf16.mxu1 %v2611_v2 }
 0x283   : > { %2361 = vmatpush3.bf16.msra.mxu0 %v2582_v35 }
 0x284   : > { %2362 = vmatprep.subr.bf16.mxu0 %v2584_v36  ;;  %2454 = vmatpush3.bf16.msra.mxu1 %v2583_v37 }
 0x287   : > { %2363 = vmatpush3.bf16.msra.mxu0 %v2585_v38 }
 0x33a   : > { %v1629_v39 = vpop.f32.mrb[8].mxu1 }
 0x33b   : > { %v2437_v40 = vpop.f32.mrb[9].mxu1 }
 0x33c   : > { %v1632_v41 = vpop.f32.mrb[10].mxu1 }
 0x33d   : > { %v2333_v42 = vpop.f32.mrb[8].mxu0  ;;  %v2438_v43 = vpop.f32.mrb[11].mxu1 }
 0x33e   : > { %v2334_v45 = vpop.f32.mrb[9].mxu0 }
 0x33f   : > { %v2335_v46 = vadd.f32 %v2334_v45, %v2333_v42  ;;  %v2336_v47 = vpop.f32.mrb[10].mxu0 }
 0x340   : > { %v2337_v48 = vpop.f32.mrb[11].mxu0 }
 0x341   : > { %v1590_v2 = vadd.f32 %v2335_v46, %v2202_v44 }
 0x343   : > { %v1630_v49 = vadd.f32 %v1629_v39, %v1590_v2 }
 0x345   : > { %v1635_v50 = vmul.f32 0.2, %v1630_v49 }
 0x347   : > { %v1636_v51 = vmax.f32 %v1630_v49, %v1635_v50 }
 0x349   : > { %1638 = vst [vmem:[#allocation4 + $0x8] sm:$0xf] %v1636_v51 }
 0x350   : > { %v1649_v52 = vld [vmem:[#allocation4 + $0x8] ss:$2 sm:$0x3]  ;;  %v1651_v53 = vld [vmem:[#allocation4 + $0x9] ss:$2 sm:$0x3] }
 0x351   : > { %v1653_v55 = vpack.c.bf16 %v1649_v52, %v1649_v52  ;;  %v1654_v56 = vpack.c.bf16 %v1651_v53, %v1651_v53  ;;  %v1640_v57 = vld [vmem:[#allocation4 + $0x7] ss:$2 sm:$0x3] }
 0x352   : > { %v1647_v58 = vmul.f32 %v1645_v54, %v1640_v57 }
 0x353   : > { %1886 = vmatprep.mubr.bf16.mxu0 %v1653_v55  ;;  %2456 = vmatmul.mubr.bf16.vlgmr.msra.gmra.mrb[12].mxu1 %v1654_v56 }
 0x354   : > { %v1652_v59 = vpack.c.bf16 %v1647_v58, %v1647_v58 }
 0x356   : > { %1887 = vmatmul.mubr.bf16.vlgmr.msra.gmra.mrb[12].mxu0 %v1652_v59 }
 0x426   : > { %v1928_v60 = vpop.f32.mrb[12].mxu1 }
 0x427   : > { %v2457_v61 = vpop.f32.mrb[13].mxu1 }
 0x428   : > { %v1931_v62 = vpop.f32.mrb[14].mxu1 }
 0x429   : > { %v2364_v63 = vpop.f32.mrb[12].mxu0  ;;  %v2458_v0 = vpop.f32.mrb[15].mxu1 }
 0x42a   : > { %v2365_v3 = vpop.f32.mrb[13].mxu0 }
 0x42b   : > { %v2366_v4 = vadd.f32 %v2365_v3, %v2364_v63  ;;  %v2367_v5 = vpop.f32.mrb[14].mxu0 }
 0x42c   : > { %v2368_v6 = vpop.f32.mrb[15].mxu0 }
 0x42d   : > { %v1889_v7 = vadd.f32 %v2366_v4, %v2227_v1 }
 0x42f   : > { %v1929_v8 = vadd.f32 %v1928_v60, %v1889_v7 }
 0x431   : > { %v1934_v9 = vmul.f32 0.2, %v1929_v8 }
 0x433   : > { %v1935_v11 = vmax.f32 %v1929_v8, %v1934_v9 }
 0x435   : > { %v1937_v12 = vmul.f32 %v1936_v10, %v1935_v11 }
 0x437   : > { %v1939_v13 = vsel %vm1938_vm1, %v1937_v12, 0.0 }
 0x438   : > { %1940 = vadd.xlane.f32.xlu1 %v1939_v13 }
 0x4c5   : > { %v1941_v15 = vpop.xlane.xlu1 %1940 }
 0x4c6   : > { %v1949_v16 = vadd.f32 %v2252_v14, %v1941_v15 }
 0x4c8   : > { %1951 = vst.msk [vmem:[%s722_s26] sm:$0x3] %vm1950_vm2, %v1949_v16 }
 0x4c9 PF: > { %s26_s23 = sadd.s32 1, %s2608_s23   ;;  %s2966_s21 = smov %s2604_s22 }
 0x4ca   : > { %p23_p5 = scmp.ge.s32.totalorder %s26_s23, 4   ;;  %s2967_s22 = smov %s2969_s14 }
 0x4cc   :  { %25 = sbr.rel (!%p23_p5) target bundleno = 2 (0x2), region = 159 }

</bundles_post_ra>
